<compile_context>
chip_gen: v5e
topology: v5e:2x2
jax: 0.10.0
libtpu: 0.0.40
codegen_flags: <defaults>
</compile_context>

<pallas_src>
import math
import numpy as np

import jax
import jax.numpy as jnp
from jax.experimental import pallas as pl
from jax.experimental.pallas import tpu as pltpu

_LANE = 128
_MAX_TM = 2048        # sublanes per tile: 2048 * 128 * 4 B = 1 MiB per f32 input block
_MIN_PALLAS_N = 2048  # below this the pallas_call fixed cost dominates -> jnp path


def _sublane_granule(dtype) -> int:
    """Native sublane tile height for a dtype: 8 (f32), 16 (bf16/f16), 32 (8-bit)."""
    return max(8, 32 // jnp.dtype(dtype).itemsize)


def _sincos(x):
    """Fused sin/cos with one shared Cody-Waite range reduction (f32 in/out).

    sin/cos lower to multi-op VPU polynomials on TPU (the EUP only handles
    exp/rcp/tanh/rsqrt), so sharing the range reduction between sin(x) and
    cos(x) removes roughly a third of the VALU ops per angle.
    """
    two_over_pi = 0.6366197723675814
    # pi/2 split into three short-mantissa constants (2x cephes DP1/DP2/DP3), so
    # kf * dp_i stays exact in f32 for any sane angle magnitude.
    dp1 = 1.5703125
    dp2 = 4.837512969970703e-4
    dp3 = 7.5497899549e-8
    kf = jnp.floor(x * two_over_pi + 0.5)            # nearest multiple of pi/2
    r = ((x - kf * dp1) - kf * dp2) - kf * dp3       # reduced arg in [-pi/4, pi/4]
    z = r * r
    # cephes single-precision minimax polynomials on [-pi/4, pi/4]
    s = r + r * z * (-1.6666654611e-1 + z * (8.3321608736e-3 + z * (-1.9515295891e-4)))
    c = 1.0 - 0.5 * z + z * z * (
        4.166664568298827e-2 + z * (-1.388731625493765e-3 + z * 2.443315711809948e-5))
    q = jnp.bitwise_and(kf.astype(jnp.int32), 3)     # quadrant; & works mod 4 for negatives
    odd = jnp.bitwise_and(q, 1) == 1
    sin_v = jnp.where(odd, c, s)
    cos_v = jnp.where(odd, s, c)
    sin_v = jnp.where(q >= 2, -sin_v, sin_v)
    cos_v = jnp.where((q == 1) | (q == 2), -cos_v, cos_v)
    return sin_v, cos_v


def _make_kernel(r_mode: str):
    """Elementwise spherical->Cartesian on one (TM, 128) tile of points."""

    def _store(out_ref, st, ct, sp, cp, rr):
        rst = st if rr is None else rr * st
        rct = ct if rr is None else rr * ct
        out_ref[0, :, :] = (rst * cp).astype(out_ref.dtype)
        out_ref[1, :, :] = (rst * sp).astype(out_ref.dtype)
        out_ref[2, :, :] = rct.astype(out_ref.dtype)

    if r_mode == "full":
        def kernel(theta_ref, phi_ref, r_ref, out_ref):
            st, ct = _sincos(theta_ref[...].astype(jnp.float32))
            sp, cp = _sincos(phi_ref[...].astype(jnp.float32))
            _store(out_ref, st, ct, sp, cp, r_ref[...].astype(jnp.float32))
    elif r_mode == "scalar":
        def kernel(theta_ref, phi_ref, r_ref, out_ref):
            st, ct = _sincos(theta_ref[...].astype(jnp.float32))
            sp, cp = _sincos(phi_ref[...].astype(jnp.float32))
            _store(out_ref, st, ct, sp, cp, r_ref[0, 0])   # scalar read from SMEM
    else:  # "none"
        def kernel(theta_ref, phi_ref, out_ref):
            st, ct = _sincos(theta_ref[...].astype(jnp.float32))
            sp, cp = _sincos(phi_ref[...].astype(jnp.float32))
            _store(out_ref, st, ct, sp, cp, None)

    return kernel


def _xyz_small(theta, phi, r, shape, out_dtype, d):
    """Plain-jnp path for tiny inputs (pallas fixed cost would dominate)."""
    th = jnp.broadcast_to(theta, shape).astype(jnp.float32)
    ph = jnp.broadcast_to(phi, shape).astype(jnp.float32)
    st, ct = jnp.sin(th), jnp.cos(th)
    sp, cp = jnp.sin(ph), jnp.cos(ph)
    x, y, z = st * cp, st * sp, ct
    if r is not None:
        rr = jnp.broadcast_to(r, shape).astype(jnp.float32)
        x, y, z = x * rr, y * rr, z * rr
    return jnp.stack([x, y, z], axis=d).astype(out_dtype)


def spherical_to_xyz(theta, phi, r=None, dim=-1):
    """JAX wrapper mirroring equitorch.nn.functional.spherical_to_xyz."""
    theta = jnp.asarray(theta)
    phi = jnp.asarray(phi)
    r_arr = None if r is None else jnp.asarray(r)

    dtypes = [theta.dtype, phi.dtype] + ([] if r_arr is None else [r_arr.dtype])
    out_dtype = jnp.result_type(*dtypes)
    if not jnp.issubdtype(out_dtype, jnp.floating):
        out_dtype = jnp.float32

    shapes = [theta.shape, phi.shape] + ([] if r_arr is None else [r_arr.shape])
    shape = jnp.broadcast_shapes(*shapes)
    N = int(np.prod(shape)) if shape else 1

    ndim_out = len(shape) + 1
    d = dim if dim >= 0 else dim + ndim_out

    if N < _MIN_PALLAS_N:
        return _xyz_small(theta, phi, r_arr, shape, out_dtype, d)

    r_mode = "none"
    if r_arr is not None:
        r_mode = "scalar" if r_arr.size == 1 else "full"

    # Lay points out lane-dense: (rows, 128).  Pad only up to the (granule, 128)
    # tile granule; the ragged last grid block is handled by Pallas masking.
    granule = _sublane_granule(out_dtype)
    tile_pts = granule * _LANE
    pad = (-N) % tile_pts
    Np = N + pad
    rows = Np // _LANE

    # Tile height: as big as possible (<= _MAX_TM sublanes) but capped so the grid
    # has >= 2 steps -> both v7x TensorCores get work.  Worst-case VMEM use is
    # (3 inputs + 3-plane output) * 1 MiB * 2 buffers ~= 12 MiB, under the scoped
    # default on all generations.
    half_rows = pl.cdiv(rows, 2)
    tm = pl.cdiv(half_rows, granule) * granule
    tm = max(granule, min(_MAX_TM, tm))
    grid = (pl.cdiv(rows, tm),)

    def _prep(a):
        a = jnp.broadcast_to(a, shape).reshape(-1)   # no-op when shapes already match
        if pad:
            a = jnp.pad(a, (0, pad))
        return a.reshape(rows, _LANE)

    vm_spec = pl.BlockSpec((tm, _LANE), lambda i: (i, 0))
    ins = [_prep(theta), _prep(phi)]
    in_specs = [vm_spec, vm_spec]
    if r_mode == "full":
        ins.append(_prep(r_arr))
        in_specs.append(vm_spec)
    elif r_mode == "scalar":
        # Scalar radius: ship one f32 through SMEM instead of a full HBM array.
        ins.append(r_arr.reshape(1, 1).astype(jnp.float32))
        in_specs.append(pl.BlockSpec(memory_space=pltpu.MemorySpace.SMEM))

    n_streamed = 2 + (1 if r_mode == "full" else 0)
    itemsize = jnp.dtype(out_dtype).itemsize
    cost = pl.CostEstimate(
        flops=70 * Np,                 # fused sincos + products (no transcendental unit use)
        transcendentals=0,
        bytes_accessed=(n_streamed + 3) * Np * itemsize,
    )

    out = pl.pallas_call(
        _make_kernel(r_mode),
        out_shape=jax.ShapeDtypeStruct((3, rows, _LANE), out_dtype),
        grid=grid,
        in_specs=in_specs,
        out_specs=pl.BlockSpec((3, tm, _LANE), lambda i: (0, i, 0)),
        compiler_params=pltpu.CompilerParams(
            dimension_semantics=("parallel",)),
        cost_estimate=cost,
    )(*ins)

    out = out.reshape(3, Np)
    if pad:
        out = out[:, :N]          # only copies when padding was actually added
    out = out.reshape((3,) + shape)
    if d != 0:
        # NOTE: for dim != 0 this is a full 3N-element XLA transpose (the module's
        # output contract); consumers that can take channel-first data should use dim=0.
        out = jnp.moveaxis(out, 0, d)
    return out


class SphericalToXYZ:
    """Mirror of the PyTorch module (no learnable parameters)."""

    def __init__(self, dim: int = -1):
        self.dim = dim

    def __call__(self, theta, phi, r=None):
        return spherical_to_xyz(theta, phi, r=r, dim=self.dim)


def _reference(theta, phi, r, dim):
    """Pure-numpy float64 reference (same angle convention as the kernel)."""
    theta = np.asarray(theta, dtype=np.float64)
    phi = np.asarray(phi, dtype=np.float64)
    st, ct = np.sin(theta), np.cos(theta)
    sp, cp = np.sin(phi), np.cos(phi)
    x = st * cp
    y = st * sp
    z = ct * np.ones_like(x)
    if r is not None:
        rr = np.asarray(r, dtype=np.float64)
        x, y, z = x * rr, y * rr, z * rr
    x, y, z = np.broadcast_arrays(x, y, z)
    return np.stack([x, y, z], axis=dim)


if __name__ == "__main__":
    key = jax.random.PRNGKey(0)
    k1, k2, k3, k4, k5, k6, k7 = jax.random.split(key, 7)

    # Case 1: full-size r, dim=-1 — Pallas path, 4096 points, granule-aligned (no pad).
    shape1 = (4, 8, 128)
    theta1 = jax.random.uniform(k1, shape1, jnp.float32, 0.0, math.pi)
    phi1 = jax.random.uniform(k2, shape1, jnp.float32, -math.pi, math.pi)
    r1 = jax.random.uniform(k3, shape1, jnp.float32, 0.5, 2.0)
    xyz1 = jax.block_until_ready(SphericalToXYZ(dim=-1)(theta1, phi1, r1))
    assert xyz1.shape == shape1 + (3,), xyz1.shape
    np.testing.assert_allclose(np.asarray(xyz1), _reference(theta1, phi1, r1, -1),
                               rtol=1e-5, atol=1e-5)

    # Case 2: scalar r (SMEM path), dim=1 — Pallas path + wrapper transpose.
    r_scalar = jnp.float32(1.7)
    xyz2 = jax.block_until_ready(SphericalToXYZ(dim=1)(theta1, phi1, r_scalar))
    assert xyz2.shape == (4, 3, 8, 128), xyz2.shape
    np.testing.assert_allclose(np.asarray(xyz2),
                               _reference(theta1, phi1, np.float64(r_scalar), 1),
                               rtol=1e-5, atol=1e-5)

    # Case 3: no r, dim=0 — unaligned point count (2635) exercises granule padding
    # and the ragged (masked) last grid block; dim=0 avoids the wrapper transpose.
    shape3 = (5, 17, 31)
    theta3 = jax.random.uniform(k4, shape3, jnp.float32, 0.0, math.pi)
    phi3 = jax.random.uniform(k5, shape3, jnp.float32, -math.pi, math.pi)
    xyz3 = jax.block_until_ready(SphericalToXYZ(dim=0)(theta3, phi3))
    assert xyz3.shape == (3,) + shape3, xyz3.shape
    np.testing.assert_allclose(np.asarray(xyz3), _reference(theta3, phi3, None, 0),
                               rtol=1e-5, atol=1e-5)

    # Case 4: tiny input -> jnp fast path.
    shape4 = (2, 8)
    theta4 = jax.random.uniform(k6, shape4, jnp.float32, 0.0, math.pi)
    phi4 = jax.random.uniform(k7, shape4, jnp.float32, -math.pi, math.pi)
    xyz4 = jax.block_until_ready(SphericalToXYZ(dim=-1)(theta4, phi4))
    assert xyz4.shape == shape4 + (3,), xyz4.shape
    np.testing.assert_allclose(np.asarray(xyz4), _reference(theta4, phi4, None, -1),
                               rtol=1e-5, atol=1e-5)

    print("KERNEL_OK")
</pallas_src>

<mosaic_0001>
module attributes {stable_mosaic.version = 11 : i64} {
  func.func @kernel(%arg0: i32, %arg1: memref<16x128xf32, #tpu.memory_space<vmem>>, %arg2: memref<16x128xf32, #tpu.memory_space<vmem>>, %arg3: memref<16x128xf32, #tpu.memory_space<vmem>>, %arg4: memref<3x16x128xf32, #tpu.memory_space<vmem>>) attributes {dimension_semantics = [#tpu.dimension_semantics<parallel>], iteration_bounds = array<i64: 2>, scalar_prefetch = 0 : i64, scratch_operands = 0 : i64, tpu.core_type = #tpu.core_type<tc>, window_params = [{transform_indices = @transform_0, window_bounds = array<i64: 16, 128>}, {transform_indices = @transform_1, window_bounds = array<i64: 16, 128>}, {transform_indices = @transform_2, window_bounds = array<i64: 16, 128>}, {transform_indices = @transform_3, window_bounds = array<i64: 3, 16, 128>}]} {
    %c0 = arith.constant 0 : index
    %c0_0 = arith.constant 0 : index
    %0 = vector.load %arg1[%c0, %c0_0] : memref<16x128xf32, #tpu.memory_space<vmem>>, vector<16x128xf32>
    %cst = arith.constant 0.636619746 : f32
    %1 = vector.broadcast %cst : f32 to vector<16x128xf32>
    %2 = arith.mulf %0, %1 : vector<16x128xf32>
    %cst_1 = arith.constant 5.000000e-01 : f32
    %3 = vector.broadcast %cst_1 : f32 to vector<16x128xf32>
    %4 = arith.addf %2, %3 : vector<16x128xf32>
    %5 = math.floor %4 : vector<16x128xf32>
    %cst_2 = arith.constant 1.5703125 : f32
    %6 = vector.broadcast %cst_2 : f32 to vector<16x128xf32>
    %7 = arith.mulf %5, %6 : vector<16x128xf32>
    %8 = arith.subf %0, %7 : vector<16x128xf32>
    %cst_3 = arith.constant 4.83751297E-4 : f32
    %9 = vector.broadcast %cst_3 : f32 to vector<16x128xf32>
    %10 = arith.mulf %5, %9 : vector<16x128xf32>
    %11 = arith.subf %8, %10 : vector<16x128xf32>
    %cst_4 = arith.constant 7.549790e-08 : f32
    %12 = vector.broadcast %cst_4 : f32 to vector<16x128xf32>
    %13 = arith.mulf %5, %12 : vector<16x128xf32>
    %14 = arith.subf %11, %13 : vector<16x128xf32>
    %15 = arith.mulf %14, %14 : vector<16x128xf32>
    %16 = arith.mulf %14, %15 : vector<16x128xf32>
    %cst_5 = arith.constant -1.95152956E-4 : f32
    %17 = vector.broadcast %cst_5 : f32 to vector<16x128xf32>
    %18 = arith.mulf %15, %17 : vector<16x128xf32>
    %cst_6 = arith.constant 0.00833216123 : f32
    %19 = vector.broadcast %cst_6 : f32 to vector<16x128xf32>
    %20 = arith.addf %19, %18 : vector<16x128xf32>
    %21 = arith.mulf %15, %20 : vector<16x128xf32>
    %cst_7 = arith.constant -0.166666552 : f32
    %22 = vector.broadcast %cst_7 : f32 to vector<16x128xf32>
    %23 = arith.addf %22, %21 : vector<16x128xf32>
    %24 = arith.mulf %16, %23 : vector<16x128xf32>
    %25 = arith.addf %14, %24 : vector<16x128xf32>
    %cst_8 = arith.constant 5.000000e-01 : f32
    %26 = vector.broadcast %cst_8 : f32 to vector<16x128xf32>
    %27 = arith.mulf %26, %15 : vector<16x128xf32>
    %cst_9 = arith.constant 1.000000e+00 : f32
    %28 = vector.broadcast %cst_9 : f32 to vector<16x128xf32>
    %29 = arith.subf %28, %27 : vector<16x128xf32>
    %30 = arith.mulf %15, %15 : vector<16x128xf32>
    %cst_10 = arith.constant 2.44331568E-5 : f32
    %31 = vector.broadcast %cst_10 : f32 to vector<16x128xf32>
    %32 = arith.mulf %15, %31 : vector<16x128xf32>
    %cst_11 = arith.constant -0.00138873165 : f32
    %33 = vector.broadcast %cst_11 : f32 to vector<16x128xf32>
    %34 = arith.addf %33, %32 : vector<16x128xf32>
    %35 = arith.mulf %15, %34 : vector<16x128xf32>
    %cst_12 = arith.constant 0.0416666456 : f32
    %36 = vector.broadcast %cst_12 : f32 to vector<16x128xf32>
    %37 = arith.addf %36, %35 : vector<16x128xf32>
    %38 = arith.mulf %30, %37 : vector<16x128xf32>
    %39 = arith.addf %29, %38 : vector<16x128xf32>
    %40 = arith.fptosi %5 : vector<16x128xf32> to vector<16x128xi32>
    %c3_i32 = arith.constant 3 : i32
    %41 = vector.broadcast %c3_i32 : i32 to vector<16x128xi32>
    %42 = arith.andi %40, %41 : vector<16x128xi32>
    %c1_i32 = arith.constant 1 : i32
    %43 = vector.broadcast %c1_i32 : i32 to vector<16x128xi32>
    %44 = arith.andi %42, %43 : vector<16x128xi32>
    %c1_i32_13 = arith.constant 1 : i32
    %45 = vector.broadcast %c1_i32_13 : i32 to vector<16x128xi32>
    %46 = arith.cmpi eq, %44, %45 : vector<16x128xi32>
    %47 = arith.select %46, %39, %25 : vector<16x128xi1>, vector<16x128xf32>
    %48 = arith.select %46, %25, %39 : vector<16x128xi1>, vector<16x128xf32>
    %c2_i32 = arith.constant 2 : i32
    %49 = vector.broadcast %c2_i32 : i32 to vector<16x128xi32>
    %50 = arith.cmpi sge, %42, %49 : vector<16x128xi32>
    %cst_14 = arith.constant 0.000000e+00 : f32
    %51 = vector.broadcast %cst_14 : f32 to vector<16x128xf32>
    %52 = arith.subf %51, %47 : vector<16x128xf32>
    %53 = arith.select %50, %52, %47 : vector<16x128xi1>, vector<16x128xf32>
    %c1_i32_15 = arith.constant 1 : i32
    %54 = vector.broadcast %c1_i32_15 : i32 to vector<16x128xi32>
    %55 = arith.cmpi eq, %42, %54 : vector<16x128xi32>
    %c2_i32_16 = arith.constant 2 : i32
    %56 = vector.broadcast %c2_i32_16 : i32 to vector<16x128xi32>
    %57 = arith.cmpi eq, %42, %56 : vector<16x128xi32>
    %58 = arith.ori %55, %57 : vector<16x128xi1>
    %cst_17 = arith.constant 0.000000e+00 : f32
    %59 = vector.broadcast %cst_17 : f32 to vector<16x128xf32>
    %60 = arith.subf %59, %48 : vector<16x128xf32>
    %61 = arith.select %58, %60, %48 : vector<16x128xi1>, vector<16x128xf32>
    %c0_18 = arith.constant 0 : index
    %c0_19 = arith.constant 0 : index
    %62 = vector.load %arg2[%c0_18, %c0_19] : memref<16x128xf32, #tpu.memory_space<vmem>>, vector<16x128xf32>
    %cst_20 = arith.constant 0.636619746 : f32
    %63 = vector.broadcast %cst_20 : f32 to vector<16x128xf32>
    %64 = arith.mulf %62, %63 : vector<16x128xf32>
    %cst_21 = arith.constant 5.000000e-01 : f32
    %65 = vector.broadcast %cst_21 : f32 to vector<16x128xf32>
    %66 = arith.addf %64, %65 : vector<16x128xf32>
    %67 = math.floor %66 : vector<16x128xf32>
    %cst_22 = arith.constant 1.5703125 : f32
    %68 = vector.broadcast %cst_22 : f32 to vector<16x128xf32>
    %69 = arith.mulf %67, %68 : vector<16x128xf32>
    %70 = arith.subf %62, %69 : vector<16x128xf32>
    %cst_23 = arith.constant 4.83751297E-4 : f32
    %71 = vector.broadcast %cst_23 : f32 to vector<16x128xf32>
    %72 = arith.mulf %67, %71 : vector<16x128xf32>
    %73 = arith.subf %70, %72 : vector<16x128xf32>
    %cst_24 = arith.constant 7.549790e-08 : f32
    %74 = vector.broadcast %cst_24 : f32 to vector<16x128xf32>
    %75 = arith.mulf %67, %74 : vector<16x128xf32>
    %76 = arith.subf %73, %75 : vector<16x128xf32>
    %77 = arith.mulf %76, %76 : vector<16x128xf32>
    %78 = arith.mulf %76, %77 : vector<16x128xf32>
    %cst_25 = arith.constant -1.95152956E-4 : f32
    %79 = vector.broadcast %cst_25 : f32 to vector<16x128xf32>
    %80 = arith.mulf %77, %79 : vector<16x128xf32>
    %cst_26 = arith.constant 0.00833216123 : f32
    %81 = vector.broadcast %cst_26 : f32 to vector<16x128xf32>
    %82 = arith.addf %81, %80 : vector<16x128xf32>
    %83 = arith.mulf %77, %82 : vector<16x128xf32>
    %cst_27 = arith.constant -0.166666552 : f32
    %84 = vector.broadcast %cst_27 : f32 to vector<16x128xf32>
    %85 = arith.addf %84, %83 : vector<16x128xf32>
    %86 = arith.mulf %78, %85 : vector<16x128xf32>
    %87 = arith.addf %76, %86 : vector<16x128xf32>
    %cst_28 = arith.constant 5.000000e-01 : f32
    %88 = vector.broadcast %cst_28 : f32 to vector<16x128xf32>
    %89 = arith.mulf %88, %77 : vector<16x128xf32>
    %cst_29 = arith.constant 1.000000e+00 : f32
    %90 = vector.broadcast %cst_29 : f32 to vector<16x128xf32>
    %91 = arith.subf %90, %89 : vector<16x128xf32>
    %92 = arith.mulf %77, %77 : vector<16x128xf32>
    %cst_30 = arith.constant 2.44331568E-5 : f32
    %93 = vector.broadcast %cst_30 : f32 to vector<16x128xf32>
    %94 = arith.mulf %77, %93 : vector<16x128xf32>
    %cst_31 = arith.constant -0.00138873165 : f32
    %95 = vector.broadcast %cst_31 : f32 to vector<16x128xf32>
    %96 = arith.addf %95, %94 : vector<16x128xf32>
    %97 = arith.mulf %77, %96 : vector<16x128xf32>
    %cst_32 = arith.constant 0.0416666456 : f32
    %98 = vector.broadcast %cst_32 : f32 to vector<16x128xf32>
    %99 = arith.addf %98, %97 : vector<16x128xf32>
    %100 = arith.mulf %92, %99 : vector<16x128xf32>
    %101 = arith.addf %91, %100 : vector<16x128xf32>
    %102 = arith.fptosi %67 : vector<16x128xf32> to vector<16x128xi32>
    %c3_i32_33 = arith.constant 3 : i32
    %103 = vector.broadcast %c3_i32_33 : i32 to vector<16x128xi32>
    %104 = arith.andi %102, %103 : vector<16x128xi32>
    %c1_i32_34 = arith.constant 1 : i32
    %105 = vector.broadcast %c1_i32_34 : i32 to vector<16x128xi32>
    %106 = arith.andi %104, %105 : vector<16x128xi32>
    %c1_i32_35 = arith.constant 1 : i32
    %107 = vector.broadcast %c1_i32_35 : i32 to vector<16x128xi32>
    %108 = arith.cmpi eq, %106, %107 : vector<16x128xi32>
    %109 = arith.select %108, %101, %87 : vector<16x128xi1>, vector<16x128xf32>
    %110 = arith.select %108, %87, %101 : vector<16x128xi1>, vector<16x128xf32>
    %c2_i32_36 = arith.constant 2 : i32
    %111 = vector.broadcast %c2_i32_36 : i32 to vector<16x128xi32>
    %112 = arith.cmpi sge, %104, %111 : vector<16x128xi32>
    %cst_37 = arith.constant 0.000000e+00 : f32
    %113 = vector.broadcast %cst_37 : f32 to vector<16x128xf32>
    %114 = arith.subf %113, %109 : vector<16x128xf32>
    %115 = arith.select %112, %114, %109 : vector<16x128xi1>, vector<16x128xf32>
    %c1_i32_38 = arith.constant 1 : i32
    %116 = vector.broadcast %c1_i32_38 : i32 to vector<16x128xi32>
    %117 = arith.cmpi eq, %104, %116 : vector<16x128xi32>
    %c2_i32_39 = arith.constant 2 : i32
    %118 = vector.broadcast %c2_i32_39 : i32 to vector<16x128xi32>
    %119 = arith.cmpi eq, %104, %118 : vector<16x128xi32>
    %120 = arith.ori %117, %119 : vector<16x128xi1>
    %cst_40 = arith.constant 0.000000e+00 : f32
    %121 = vector.broadcast %cst_40 : f32 to vector<16x128xf32>
    %122 = arith.subf %121, %110 : vector<16x128xf32>
    %123 = arith.select %120, %122, %110 : vector<16x128xi1>, vector<16x128xf32>
    %c0_41 = arith.constant 0 : index
    %c0_42 = arith.constant 0 : index
    %124 = vector.load %arg3[%c0_41, %c0_42] : memref<16x128xf32, #tpu.memory_space<vmem>>, vector<16x128xf32>
    %125 = arith.mulf %124, %53 : vector<16x128xf32>
    %126 = arith.mulf %124, %61 : vector<16x128xf32>
    %127 = arith.mulf %125, %123 : vector<16x128xf32>
    %c0_43 = arith.constant 0 : index
    %c0_44 = arith.constant 0 : index
    %c0_45 = arith.constant 0 : index
    %128 = vector.load %arg4[%c0_43, %c0_44, %c0_45] : memref<3x16x128xf32, #tpu.memory_space<vmem>>, vector<1x16x128xf32>
    %129 = vector.shape_cast %128 : vector<1x16x128xf32> to vector<16x128xf32>
    %130 = vector.shape_cast %127 : vector<16x128xf32> to vector<1x16x128xf32>
    tpu.vector_store %arg4[%c0_43, %c0_44, %c0_45], %130 {strides = array<i32>} : memref<3x16x128xf32, #tpu.memory_space<vmem>>, vector<1x16x128xf32>,
    %131 = arith.mulf %125, %115 : vector<16x128xf32>
    %c1 = arith.constant 1 : index
    %c0_46 = arith.constant 0 : index
    %c0_47 = arith.constant 0 : index
    %132 = vector.load %arg4[%c1, %c0_46, %c0_47] : memref<3x16x128xf32, #tpu.memory_space<vmem>>, vector<1x16x128xf32>
    %133 = vector.shape_cast %132 : vector<1x16x128xf32> to vector<16x128xf32>
    %134 = vector.shape_cast %131 : vector<16x128xf32> to vector<1x16x128xf32>
    tpu.vector_store %arg4[%c1, %c0_46, %c0_47], %134 {strides = array<i32>} : memref<3x16x128xf32, #tpu.memory_space<vmem>>, vector<1x16x128xf32>,
    %c2 = arith.constant 2 : index
    %c0_48 = arith.constant 0 : index
    %c0_49 = arith.constant 0 : index
    %135 = vector.load %arg4[%c2, %c0_48, %c0_49] : memref<3x16x128xf32, #tpu.memory_space<vmem>>, vector<1x16x128xf32>
    %136 = vector.shape_cast %135 : vector<1x16x128xf32> to vector<16x128xf32>
    %137 = vector.shape_cast %126 : vector<16x128xf32> to vector<1x16x128xf32>
    tpu.vector_store %arg4[%c2, %c0_48, %c0_49], %137 {strides = array<i32>} : memref<3x16x128xf32, #tpu.memory_space<vmem>>, vector<1x16x128xf32>,
    return
  }
  func.func @transform_0(%arg0: i32) -> (i32, i32) {
    %c0_i32 = arith.constant 0 : i32
    %c0_i32_0 = arith.constant 0 : i32
    return %arg0, %c0_i32 : i32, i32
  }
  func.func @transform_1(%arg0: i32) -> (i32, i32) {
    %c0_i32 = arith.constant 0 : i32
    %c0_i32_0 = arith.constant 0 : i32
    return %arg0, %c0_i32 : i32, i32
  }
  func.func @transform_2(%arg0: i32) -> (i32, i32) {
    %c0_i32 = arith.constant 0 : i32
    %c0_i32_0 = arith.constant 0 : i32
    return %arg0, %c0_i32 : i32, i32
  }
  func.func @transform_3(%arg0: i32) -> (i32, i32, i32) {
    %c0_i32 = arith.constant 0 : i32
    %c0_i32_0 = arith.constant 0 : i32
    %c0_i32_1 = arith.constant 0 : i32
    return %c0_i32, %arg0, %c0_i32_0 : i32, i32, i32
  }
}

</mosaic_0001>

<bundles_post_ra>
// kernel: tpu_custom_call.1
= control target key start
LH: loop header
LB: loop body
LE: loop exit
PB: predicated region body
PF: predicated region fallthrough
CT: control target
= control target key end

     0   :  { %s1190_s0 = inlined_call_operand.hbm [shape: f32[32,128], index: 0, kind: input, shape index: {}]   ;;  %s1191_s1 = inlined_call_operand.hbm [shape: f32[32,128], index: 1, kind: input, shape index: {}]   ;;  %s1192_s2 = inlined_call_operand.hbm [shape: f32[32,128], index: 2, kind: input, shape index: {}]   ;;  %s1193_s3 = inlined_call_operand.hbm [shape: f32[3,32,128], index: 3, kind: output, shape index: {}]  }
   0x1   :  { %1196 = sst [smem:[#allocation15_spill]] %s1190_s0 }
   0x2   :  { %1197 = sst [smem:[#allocation16_spill]] %s1191_s1 }
   0x3   :  { %8 = vsyncpa [#allocation3], 0 }
   0x4   :  { %10 = vsyncpa [#allocation3 + $0x1], 0 }
   0x5   :  { %11 = vsyncpa [#allocation6], 0 }
   0x6   :  { %13 = vsyncpa [#allocation6 + $0x1], 0 }
   0x7   :  { %14 = vsyncpa [#allocation4], 0 }
   0x8   :  { %16 = vsyncpa [#allocation4 + $0x1], 0  ;;  %s884_s12 = smov 0   ;;  %s886_s13 = smov 0  }
   0x9   :  { %s888_s14 = smov 0   ;;  %s890_s15 = smov 0  }
   0xa LB: > { %s905_s16 = sadd.s32 4294967295, %s853_s15   ;;  %s613_s17 = sadd.s32 4294967294, %s853_s15   ;;  %s853_s15 = sphi %s890_s15, %s1219_s15   ;;  %s849_s14 = sphi %s888_s14, %s1218_s14   ;;  %s845_s13 = sphi %s886_s13, %s1217_s13   ;;  %s841_s12 = sphi %s884_s12, %s1216_s12  }
   0xb   : > { %s909_s18 = sadd.s32 1, %s853_s15   ;;  %s29_s19 = sadd.s32 1, %s849_s14 }
   0xc   : > { %s26_s20 = ssub.s32 %s853_s15, %s909_s18  ;;  %p36_p0 = scmp.ne.s32.totalorder %s849_s14, %s845_s13 }
   0xd   : > { %p27_p1 = scmp.eq.s32.totalorder %s26_s20, 0  ;;  %p37_p2 = scmp.eq.s32.totalorder %s853_s15, 0 }
   0xe   : > { %p42_p3 = scmp.ne.s32.totalorder %s845_s13, %s841_s12  ;;  %p43_p4 = scmp.eq.s32.totalorder %s905_s16, 0 }
   0xf   : > { %s921_s21 = scalar_select %p27_p1, %s849_s14, %s29_s19  }
  0x10   : > { %p38_p5 = por %p37_p2, %p36_p0  ;;  %p923_p6 = por %p43_p4, %p42_p3 }
  0x11   : > { %1198 = sst [smem:[#allocation14_spill]] %s921_s21  ;;  %p118_p7 = scmp.eq.s32.totalorder %s905_s16, 1 }
  0x12   : > { %p124_p8 = scmp.eq.s32.totalorder %s613_s17, 1  ;;  %p615_p9 = scmp.ge.s32.totalorder %s853_s15, 2 }
  0x13   : > { %p678_p10 = scmp.lt.s32.totalorder %s853_s15, 2  ;;  %p930_p11 = por %p118_p7, %p36_p0 }
  0x14   : > { %p934_p12 = por %p124_p8, %p42_p3  ;;  %s144_s25 = sand.u32 1, %s849_s14  }
  0x15   : > { %s940_s26 = sshll.u32 %s853_s15, 4  ;;  %s944_s27 = sshll.u32 %s144_s25, 4 }
  0x16   : > { %p946_p13 = pnand %p678_p10, %p38_p5  ;;  %s166_s29 = sand.u32 1, %s853_s15  }
  0x17   : > { %s1203_s1 = sld [smem:[#allocation16_spill]]  ;;  %s170_s6 = scalar_lea.vmem [#allocation5], %s944_s27 }
  0x18   : > { %s178_s7 = sshll.u32 %s170_s6, 4  ;;  %p625_p0 = scmp.ge.s32.totalorder %s853_s15, 1  ;;  %s179_s7 = int_to_ptr.vmem [resolvable:$true] %s178_s7 }
  0x19   : > { %s957_s9 = scalar_lea.sflag [#allocation6], %s166_s29  ;;  %p725_p2 = pneg %p946_p13 }
  0x1d   : > { %s175_s5 = scalar_lea.hbm %s1203_s1, %s940_s26  ;;  %s728_s20 = scalar_lea.hbm %s1203_s1, 32 }
  0x1e   : > { %s176_s8 = sshll.u32 %s175_s5, 4  ;;  %s177_s8 = int_to_ptr.hbm [resolvable:$true] %s176_s8 }
  0x1f   : > { %s721_s10 = sshra.s32 %s177_s8, 4  ;;  %s722_s10 = int_to_ptr.hbm [resolvable:$true] %s721_s10 }
  0x20   : > { %s723_s11 = scalar_lea.hbm %s722_s10, 16  ;;  %p729_p5 = scmp.lt.s32.totalorder %s722_s10, %s1203_s1 }
  0x21   : > { %p724_p1 = scmp.ne.s32.totalorder %s722_s10, %s723_s11  ;;  %p730_p7 = scmp.lt.s32.totalorder %s728_s20, %s723_s11 }
  0x23   : > { %p726_p3 = pnand %p725_p2, %p724_p1  ;;  %p731_p8 = por %p730_p7, %p729_p5 }
  0x25   : > { %p727_p4 = pneg %p726_p3 }
  0x27   : > { %p732_p10 = pnand %p731_p8, %p727_p4 }
  0x29   : > { %735 = shalt.err (!%p732_p10)
}
  0x2a   : > { %s1194_s29 = smov 128   ;;  %s856_s5 = smov 8  }
  0x2b   : > { %670 = dma.hbm_to_vmem [thread:$0]  (!%p946_p13), %s177_s8, 256, %s179_s7, %s957_s9, %s1194_s29, %s1194_s29, %s856_s5  }
  0x2c   : > { %p208_p1 = scmp.lt.s32.totalorder %s853_s15, 3  ;;  %s1204_s0 = sld [smem:[#allocation15_spill]] }
  0x2d   : > { %s148_s20 = scalar_lea.vmem [#allocation2], %s944_s27  ;;  %s145_s4 = scalar_lea.sflag [#allocation3], %s144_s25 }
  0x2e   : > { %p983_p3 = pnand %p625_p0, %p208_p1  ;;  %s156_s30 = sshll.u32 %s148_s20, 4  ;;  %s157_s30 = int_to_ptr.vmem [resolvable:$true] %s156_s30 }
  0x32   : > { %s153_s11 = scalar_lea.hbm %s1204_s0, %s940_s26  ;;  %s758_s10 = scalar_lea.hbm %s1204_s0, 32 }
  0x33   : > { %s154_s19 = sshll.u32 %s153_s11, 4  ;;  %s155_s19 = int_to_ptr.hbm [resolvable:$true] %s154_s19 }
  0x34   : > { %s751_s1 = sshra.s32 %s155_s19, 4  ;;  %s752_s1 = int_to_ptr.hbm [resolvable:$true] %s751_s1 }
  0x35   : > { %s753_s7 = scalar_lea.hbm %s752_s1, 16  ;;  %p759_p0 = scmp.lt.s32.totalorder %s752_s1, %s1204_s0 }
  0x36   : > { %p754_p4 = scmp.ne.s32.totalorder %s752_s1, %s753_s7  ;;  %p760_p8 = scmp.lt.s32.totalorder %s758_s10, %s753_s7 }
  0x38   : > { %p756_p5 = pnand %p754_p4, %p725_p2  ;;  %p761_p10 = por %p760_p8, %p759_p0 }
  0x3a   : > { %p757_p7 = pneg %p756_p5 }
  0x3c   : > { %p762_p1 = pnand %p761_p10, %p757_p7 }
  0x3e   : > { %765 = shalt.err (!%p762_p1)
}
  0x3f   : > { %s1206_s25 = smov 128   ;;  %s197_s6 = scalar_lea.hbm %s1192_s2, %s940_s26 }
  0x40   : > { %667 = dma.hbm_to_vmem [thread:$0]  (!%p946_p13), %s155_s19, 256, %s157_s30, %s145_s4, %s1206_s25, %s1206_s25, %s856_s5  }
  0x41   : > { %s192_s21 = scalar_lea.vmem [#allocation7], %s944_s27  ;;  %s198_s1 = sshll.u32 %s197_s6, 4  ;;  %s199_s1 = int_to_ptr.hbm [resolvable:$true] %s198_s1 }
  0x42   : > { %s200_s29 = sshll.u32 %s192_s21, 4  ;;  %s781_s7 = sshra.s32 %s199_s1, 4  ;;  %s201_s29 = int_to_ptr.vmem [resolvable:$true] %s200_s29  ;;  %s782_s7 = int_to_ptr.hbm [resolvable:$true] %s781_s7 }
  0x43   : > { %s783_s10 = scalar_lea.hbm %s782_s7, 16  ;;  %s788_s19 = scalar_lea.hbm %s1192_s2, 32 }
  0x44   : > { %p784_p4 = scmp.ne.s32.totalorder %s782_s7, %s783_s10  ;;  %p789_p0 = scmp.lt.s32.totalorder %s782_s7, %s1192_s2 }
  0x45   : > { %p790_p8 = scmp.lt.s32.totalorder %s788_s19, %s783_s10 }
  0x46   : > { %p786_p5 = pnand %p784_p4, %p725_p2 }
  0x47   : > { %p791_p10 = por %p790_p8, %p789_p0 }
  0x48   : > { %p787_p7 = pneg %p786_p5 }
  0x4a   : > { %p792_p1 = pnand %p791_p10, %p787_p7 }
  0x4c   : > { %795 = shalt.err (!%p792_p1)
}
  0x4d   : > { %673 = dma.hbm_to_vmem [thread:$0]  (!%p946_p13), %s199_s1, 256, %s201_s29, %s957_s9, %s1206_s25, %s1206_s25, %s856_s5  }
  0x4e   : > { %212 = sbr.rel (%p983_p3) target bundleno = 147 (0x93), region = 32  ;;  %s1027_s0 = sand.u32 (!%p983_p3), 1, %s845_s13  }
  0x4f   : > { %s1030_s21 = sshll.u32 (!%p983_p3), %s1027_s0, 4  ;;  %s215_s26 = scalar_lea.sflag (!%p983_p3), [#allocation3], %s1027_s0 }
  0x50   : > { %s218_s27 = scalar_lea.vmem (!%p983_p3), [#allocation2], %s1030_s21 }
  0x53   : > { %828 = dma.done.wait (%p923_p6), %s215_s26, 256  }
  0x54   : > { %830 = vsyncadd (%p923_p6), %s215_s26, 4294967040  ;;  %s224_s28 = sand.u32 1, %s905_s16   ;;  %s228_s5 = scalar_lea.vmem [#allocation5], %s1030_s21 }
  0x55   : > { %s225_s9 = scalar_lea.sflag [#allocation6], %s224_s28 }
  0x56   : > { %832 = dma.done.wait (%p923_p6), %s225_s9, 512  }
  0x57   : > { %834 = vsyncadd (%p923_p6), %s225_s9, 4294966784  ;;  %v276_v0 = vld [vmem:[%s218_s27] sm:$0xff]  ;;  %v277_v2 = vld [vmem:[%s218_s27 + $0x8] sm:$0xff]  ;;  %s641_s22 = smul.u32 48, %s1027_s0  ;;  %s238_s17 = scalar_lea.vmem [#allocation7], %s1030_s21 }
  0x58   : > { %v358_v1 = vld [vmem:[%s228_s5] sm:$0xff]  ;;  %v278_v3 = vmul.f32 0.63661975, %v276_v0  ;;  %v1044_v5 = vld [vmem:[%s228_s5 + $0x8] sm:$0xff]  ;;  %v279_v6 = vmul.f32 0.63661975, %v277_v2 }
  0x59   : > { %v360_v4 = vmul.f32 0.63661975, %v358_v1  ;;  %v361_v7 = vmul.f32 0.63661975, %v1044_v5  ;;  %s1121_s25 = scalar_lea.vmem [#allocation8], %s641_s22  ;;  %s459_s20 = scalar_lea.sflag [#allocation4], %s1027_s0 }
  0x5a   : > { %v280_v8 = vadd.f32 0.5, %v278_v3  ;;  %v281_v10 = vadd.f32 0.5, %v279_v6 }
  0x5b   : > { %v362_v9 = vadd.f32 0.5, %v360_v4  ;;  %v363_v11 = vadd.f32 0.5, %v361_v7 }
  0x5c   : > { %v282_v12 = vfloor.f32 %v280_v8  ;;  %v283_v14 = vfloor.f32 %v281_v10 }
  0x5d   : > { %v364_v13 = vfloor.f32 %v362_v9  ;;  %v1047_v21 = vfloor.f32 %v363_v11 }
  0x5e   : > { %v284_v15 = vmul.f32 1.5703125, %v282_v12  ;;  %v288_v16 = vmul.f32 0.0004837513, %v282_v12  ;;  %v643_v17 = vcvt.f32.s32 %v282_v12  ;;  %v292_v23 = vmul.f32 7.54979e-08, %v282_v12 }
  0x5f   : > { %v366_v18 = vmul.f32 1.5703125, %v364_v13  ;;  %v370_v19 = vmul.f32 0.0004837513, %v364_v13  ;;  %v647_v20 = vcvt.f32.s32 %v364_v13  ;;  %v285_v24 = vmul.f32 1.5703125, %v283_v14 }
  0x60   : > { %v286_v22 = vsub.f32 %v276_v0, %v284_v15  ;;  %v289_v25 = vmul.f32 0.0004837513, %v283_v14  ;;  %v1049_v26 = vand.u32 3, %v643_v17  ;;  %v374_v28 = vmul.f32 7.54979e-08, %v364_v13 }
  0x61   : > { %v368_v27 = vsub.f32 %v358_v1, %v366_v18  ;;  %v645_v29 = vcvt.f32.s32 %v283_v14  ;;  %v1051_v31 = vand.u32 3, %v647_v20  ;;  %v287_v32 = vsub.f32 %v277_v2, %v285_v24 }
  0x62   : > { %v290_v30 = vsub.f32 %v286_v22, %v288_v16  ;;  %v293_v33 = vmul.f32 7.54979e-08, %v283_v14  ;;  %v334_v38 = vand.u32 1, %v1049_v26  ;;  %v367_v40 = vmul.f32 1.5703125, %v1047_v21 }
  0x63   : > { %v372_v34 = vsub.f32 %v368_v27, %v370_v19  ;;  %v291_v36 = vsub.f32 %v287_v32, %v289_v25  ;;  %v1053_v37 = vand.u32 3, %v645_v29  ;;  %v416_v42 = vand.u32 1, %v1051_v31 }
  0x64   : > { %v294_v35 = vsub.f32 %v290_v30, %v292_v23  ;;  %v371_v44 = vmul.f32 0.0004837513, %v1047_v21  ;;  %v369_v47 = vsub.f32 %v1044_v5, %v367_v40  ;;  %v375_v48 = vmul.f32 7.54979e-08, %v1047_v21 }
  0x65   : > { %v376_v39 = vsub.f32 %v372_v34, %v374_v28  ;;  %v1058_v43 = vsub.f32 %v291_v36, %v293_v33  ;;  %v335_v46 = vand.u32 1, %v1053_v37  ;;  %v649_v52 = vcvt.f32.s32 %v1047_v21 }
  0x66   : > { %v296_v41 = vmul.f32 %v294_v35, %v294_v35  ;;  %vm1065_vm0 = vcmp.eq.s32.totalorder %v334_v38, 1  ;;  %vm1069_vm1 = vcmp.eq.s32.totalorder %v416_v42, 1  ;;  %vm430_vm2 = vcmp.eq.s32.totalorder %v1051_v31, 1 }
  0x67   : > { %v378_v45 = vmul.f32 %v376_v39, %v376_v39  ;;  %vm432_vm3 = vcmp.eq.s32.totalorder %v1051_v31, 2  ;;  %v297_v2 = vmul.f32 %v1058_v43, %v1058_v43  ;;  %v373_v6 = vsub.f32 %v369_v47, %v371_v44 }
  0x68   : > { %v298_v49 = vmul.f32 %v296_v41, %v294_v35  ;;  %v300_v50 = vmul.f32 -0.00019515296, %v296_v41  ;;  %v312_v51 = vmul.f32 0.5, %v296_v41  ;;  %v316_v53 = vmul.f32 %v296_v41, %v296_v41  ;;  %vm434_vm7 = vmor %vm430_vm2, %vm432_vm3 }
  0x69   : > { %v318_v54 = vmul.f32 2.4433157e-05, %v296_v41  ;;  %v382_v55 = vmul.f32 -0.00019515296, %v378_v45  ;;  %v394_v56 = vmul.f32 0.5, %v378_v45  ;;  %v380_v60 = vmul.f32 %v378_v45, %v376_v39 }
  0x6a   : > { %v302_v57 = vadd.f32 0.008332161, %v300_v50  ;;  %v314_v58 = vsub.f32 1.0, %v312_v51  ;;  %v400_v61 = vmul.f32 2.4433157e-05, %v378_v45  ;;  %v398_v0 = vmul.f32 %v378_v45, %v378_v45  ;;  %v440_v50 = vld [vmem:[%s238_s17] sm:$0xff] }
  0x6b   : > { %v320_v62 = vadd.f32 -0.0013887316, %v318_v54  ;;  %v384_v63 = vadd.f32 0.008332161, %v382_v55  ;;  %v396_v4 = vsub.f32 1.0, %v394_v56  ;;  %vm342_vm4 = vcmp.ge.s32.totalorder %v1049_v26, 2 }
  0x6c   : > { %v304_v3 = vmul.f32 %v302_v57, %v296_v41  ;;  %v402_v5 = vadd.f32 -0.0013887316, %v400_v61  ;;  %v299_v9 = vmul.f32 %v297_v2, %v1058_v43  ;;  %v301_v10 = vmul.f32 -0.00019515296, %v297_v2 }
  0x6d   : > { %v322_v7 = vmul.f32 %v320_v62, %v296_v41  ;;  %v386_v8 = vmul.f32 %v384_v63, %v378_v45  ;;  %v313_v13 = vmul.f32 0.5, %v297_v2  ;;  %v317_v14 = vmul.f32 %v297_v2, %v297_v2 }
  0x6e   : > { %v306_v11 = vadd.f32 -0.16666655, %v304_v3  ;;  %v404_v12 = vmul.f32 %v402_v5, %v378_v45  ;;  %v303_v17 = vadd.f32 0.008332161, %v301_v10  ;;  %v1079_v18 = vsub.f32 %v373_v6, %v375_v48 }
  0x6f   : > { %v324_v15 = vadd.f32 0.041666646, %v322_v7  ;;  %v388_v16 = vadd.f32 -0.16666655, %v386_v8  ;;  %v315_v21 = vsub.f32 1.0, %v313_v13  ;;  %vm1081_vm5 = vcmp.eq.s32.totalorder %v335_v46, 1 }
  0x70   : > { %v308_v19 = vmul.f32 %v306_v11, %v298_v49  ;;  %v406_v20 = vadd.f32 0.041666646, %v404_v12  ;;  %v319_v22 = vmul.f32 2.4433157e-05, %v297_v2  ;;  %v305_v25 = vmul.f32 %v303_v17, %v297_v2  ;;  %v441_v12 = vld [vmem:[%s238_s17 + $0x8] sm:$0xff] }
  0x71   : > { %v326_v23 = vmul.f32 %v324_v15, %v316_v53  ;;  %v390_v24 = vmul.f32 %v388_v16, %v380_v60  ;;  %v379_v28 = vmul.f32 %v1079_v18, %v1079_v18  ;;  %v1087_v33 = vand.u32 3, %v649_v52 }
  0x72   : > { %v310_v29 = vadd.f32 %v308_v19, %v294_v35  ;;  %v408_v30 = vmul.f32 %v406_v20, %v398_v0  ;;  %v321_v32 = vadd.f32 -0.0013887316, %v319_v22  ;;  %v307_v38 = vadd.f32 -0.16666655, %v305_v25 }
  0x73   : > { %v328_v34 = vadd.f32 %v326_v23, %v314_v58  ;;  %v392_v36 = vadd.f32 %v390_v24, %v376_v39  ;;  %v381_v40 = vmul.f32 %v379_v28, %v1079_v18  ;;  %vm343_vm6 = vcmp.ge.s32.totalorder %v1053_v37, 2 }
  0x74   : > { %v410_v41 = vadd.f32 %v408_v30, %v396_v4  ;;  %v323_v42 = vmul.f32 %v321_v32, %v297_v2  ;;  %v383_v44 = vmul.f32 -0.00019515296, %v379_v28  ;;  %v395_v45 = vmul.f32 0.5, %v379_v28 }
  0x75   : > { %v338_v35 = vsel %vm1065_vm0, %v328_v34, %v310_v29  ;;  %v309_v46 = vmul.f32 %v307_v38, %v299_v9  ;;  %v399_v47 = vmul.f32 %v379_v28, %v379_v28  ;;  %v401_v48 = vmul.f32 2.4433157e-05, %v379_v28 }
  0x76   : > { %v344_v49 = vsub.f32 0.0, %v338_v35  ;;  %v422_v39 = vsel %vm1069_vm1, %v392_v36, %v410_v41  ;;  %v325_v51 = vadd.f32 0.041666646, %v323_v42  ;;  %v385_v52 = vadd.f32 0.008332161, %v383_v44 }
  0x77   : > { %v436_v53 = vsub.f32 0.0, %v422_v39  ;;  %v311_v54 = vadd.f32 %v309_v46, %v1058_v43  ;;  %v397_v55 = vsub.f32 1.0, %v395_v45  ;;  %v403_v56 = vadd.f32 -0.0013887316, %v401_v48 }
  0x78   : > { %v346_v57 = vsel %vm342_vm4, %v344_v49, %v338_v35  ;;  %v327_v58 = vmul.f32 %v325_v51, %v317_v14  ;;  %v387_v60 = vmul.f32 %v385_v52, %v379_v28  ;;  %v417_v61 = vand.u32 1, %v1087_v33 }
  0x79   : > { %v438_v62 = vsel %vm434_vm7, %v436_v53, %v422_v39  ;;  %v442_v63 = vmul.f32 %v440_v50, %v346_v57  ;;  %v405_v0 = vmul.f32 %v403_v56, %v379_v28  ;;  %vm431_vm8 = vcmp.eq.s32.totalorder %v1087_v33, 1 }
  0x7a   : > { %v329_v2 = vadd.f32 %v327_v58, %v315_v21  ;;  %v389_v3 = vadd.f32 -0.16666655, %v387_v60  ;;  %vm1108_vm9 = vcmp.eq.s32.totalorder %v417_v61, 1  ;;  %vm433_vm10 = vcmp.eq.s32.totalorder %v1087_v33, 2 }
  0x7b   : > { %v446_v4 = vmul.f32 %v442_v63, %v438_v62  ;;  %v407_v5 = vadd.f32 0.041666646, %v405_v0  ;;  %v420_v6 = vsel %vm1069_vm1, %v410_v41, %v392_v36  ;;  %vm424_vm11 = vcmp.ge.s32.totalorder %v1051_v31, 2 }
  0x7c   : > { %v339_v7 = vsel %vm1081_vm5, %v329_v2, %v311_v54  ;;  %v391_v8 = vmul.f32 %v389_v3, %v381_v40  ;;  %v426_v9 = vsub.f32 0.0, %v420_v6  ;;  %vm425_vm12 = vcmp.ge.s32.totalorder %v1087_v33, 2 }
  0x7d   : > { %448 = vst [vmem:[%s1121_s25] sm:$0xff] %v446_v4  ;;  %v345_v10 = vsub.f32 0.0, %v339_v7  ;;  %v409_v11 = vmul.f32 %v407_v5, %v399_v47  ;;  %v340_v1 = vsel %vm1065_vm0, %v310_v29, %v328_v34  ;;  %vm348_vm13 = vcmp.eq.s32.totalorder %v1049_v26, 1  ;;  %vm435_vm0 = vmor %vm431_vm8, %vm433_vm10 }
  0x7e   : > { %v393_v31 = vadd.f32 %v391_v8, %v1079_v18  ;;  %v428_v13 = vsel %vm424_vm11, %v426_v9, %v420_v6  ;;  %vm350_vm14 = vcmp.eq.s32.totalorder %v1049_v26, 2  ;;  %v354_v14 = vsub.f32 0.0, %v340_v1 }
  0x7f   : > { %v347_v15 = vsel %vm343_vm6, %v345_v10, %v339_v7  ;;  %v411_v16 = vadd.f32 %v409_v11, %v397_v55  ;;  %v450_v17 = vmul.f32 %v442_v63, %v428_v13  ;;  %vm352_vm15 = vmor %vm348_vm13, %vm350_vm14  ;;  %v341_v59 = vsel %vm1081_vm5, %v311_v54, %v329_v2 }
  0x80   : > { %v443_v18 = vmul.f32 %v441_v12, %v347_v15  ;;  %v356_v19 = vsel %vm352_vm15, %v354_v14, %v340_v1  ;;  %vm349_vm1 = vcmp.eq.s32.totalorder %v1053_v37, 1  ;;  %vm351_vm2 = vcmp.eq.s32.totalorder %v1053_v37, 2 }
  0x81   : > { %v423_v26 = vsel %vm1108_vm9, %v393_v31, %v411_v16  ;;  %629 = vst [vmem:[%s1121_s25 + $0x10] sm:$0xff] %v450_v17  ;;  %v421_v20 = vsel %vm1108_vm9, %v411_v16, %v393_v31  ;;  %v444_v21 = vmul.f32 %v440_v50, %v356_v19  ;;  %vm353_vm3 = vmor %vm349_vm1, %vm351_vm2  ;;  %v355_v22 = vsub.f32 0.0, %v341_v59 }
  0x82   : > { %v437_v23 = vsub.f32 0.0, %v423_v26  ;;  %v427_v24 = vsub.f32 0.0, %v421_v20 }
  0x83   : > { %631 = vst [vmem:[%s1121_s25 + $0x20] sm:$0xff] %v444_v21  ;;  %v357_v25 = vsel %vm353_vm3, %v355_v22, %v341_v59 }
  0x84   : > { %v439_v27 = vsel %vm435_vm0, %v437_v23, %v423_v26  ;;  %v429_v37 = vsel %vm425_vm12, %v427_v24, %v421_v20  ;;  %v445_v28 = vmul.f32 %v441_v12, %v357_v25 }
  0x85   : > { %v447_v29 = vmul.f32 %v443_v18, %v439_v27  ;;  %v451_v30 = vmul.f32 %v443_v18, %v429_v37 }
  0x86   : > { %632 = vst [vmem:[%s1121_s25 + $0x28] sm:$0xff] %v445_v28 }
  0x87   : > { %449 = vst [vmem:[%s1121_s25 + $0x8] sm:$0xff] %v447_v29 }
  0x88   : > { %630 = vst [vmem:[%s1121_s25 + $0x18] sm:$0xff] %v451_v30 }
  0x89   : > { %s640_s8 = sshll.u32 %s905_s16, 4  ;;  %s481_s6 = sshll.u32 %s1121_s25, 4  ;;  %s482_s6 = int_to_ptr.vmem [resolvable:$true] %s481_s6 }
  0x8a   : > { %s470_s7 = scalar_lea.hbm %s1193_s3, %s640_s8  ;;  %s857_s11 = smov 256  }
  0x8b   : > { %s483_s10 = sshll.u32 %s470_s7, 4  ;;  %656 = sst [smem:[#allocation10]] (%p930_p11), %s857_s11  ;;  %s484_s10 = int_to_ptr.hbm [resolvable:$true] %s483_s10 }
  0x8c   : > { %s858_s19 = smov 512   ;;  %s859_s30 = smov 2  }
  0x8d   : > { %657 = sst [smem:[#allocation10 + $0x1]] (%p930_p11), %s858_s19  ;;  %s860_s16 = smov 128  }
  0x8e   : > { %658 = sst [smem:[#allocation10 + $0x2]] (%p930_p11), %s859_s30  ;;  %s861_s4 = smov 8  }
  0x8f   : > { %659 = sst [smem:[#allocation10 + $0x3]] (%p930_p11), %s860_s16  ;;  %s862_s0 = smov [#allocation9]  }
  0x90   : > { %660 = sst [smem:[#allocation10 + $0x4]] (%p930_p11), %s860_s16  ;;  %s863_s21 = smov 0  }
  0x91   : > { %661 = sst [smem:[#allocation10 + $0x5]] (%p930_p11), %s861_s4 }
  0x92   : > { %662 = dma.general (%p930_p11), %s482_s6, 768, %s484_s10, %s459_s20, %s862_s0, [#allocation10], %s863_s21, 0  }
  0x93 PF: > { %s511_s26 = sand.u32 1, %s841_s12   ;;  %p675_p6 = pnand %p615_p9, %p934_p12 }
  0x94   : > { %s512_s27 = scalar_lea.sflag [#allocation4], %s511_s26 }
  0x95   : > { %p676_p13 = pneg %p675_p6 }
  0x97   : > { %836 = dma.done.wait (%p676_p13), %s512_s27, 768  }
  0x98   : > { %838 = vsyncadd (%p676_p13), %s512_s27, 4294966528  ;;  %s1215_s28 = sld [smem:[#allocation14_spill]]  ;;  %p19_p2 = scmp.ge.s32.totalorder %s909_s18, 4  }
  0x99   : > { %s1216_s12 = smov %s845_s13  ;;  %s1217_s13 = smov %s849_s14 }
  0x9a   : > { %s1219_s15 = smov %s909_s18  ;;  %21 = sbr.rel (!%p19_p2) target bundleno = 10 (0xa), region = 108 }
  0x9e   : > { %s1218_s14 = smov %s1215_s28 }
  0x9f   :  { %518 = vsyncpa [#allocation3], 1 }
  0xa0   :  { %520 = vsyncpa [#allocation3 + $0x1], 1 }
  0xa1   :  { %521 = vsyncpa [#allocation6], 1 }
  0xa2   :  { %523 = vsyncpa [#allocation6 + $0x1], 1 }
  0xa3   :  { %524 = vsyncpa [#allocation4], 1 }
  0xa4   :  { %526 = vsyncpa [#allocation4 + $0x1], 1 }

</bundles_post_ra>
